<compile_context>
chip_gen: v6e
topology: v6e:2x2x1
jax: 0.10.0
libtpu: 0.0.40
codegen_flags: <defaults>
</compile_context>

<pallas_src>
import functools

import jax
import jax.numpy as jnp
from jax.experimental import pallas as pl
from jax.experimental.pallas import tpu as pltpu

ALPHA = 0.2          # LeakyReLU slope in GraphAttentionLayer
NEG_BIG = -9e15      # masking constant from the PyTorch code
LANE = 128           # TPU lane width


def _relu(v):
    return jnp.maximum(v, 0.0)


def _elu(v):
    return jnp.where(v > 0, v, jnp.exp(v) - 1.0)


def _leaky_relu(v):
    return jnp.where(v > 0, v, ALPHA * v)


# ------------------------------- kernel -------------------------------------

def _gat(h_act, W, a1_row, a2_row, mask_add, B, N):
    """GraphAttentionLayer (concat=True, eval mode) on a folded (B*N, F) slab.

    h_act: (B*N, F) f32; W: (F, F) compute dtype; a*_row: (1, F) f32;
    mask_add: (N, N) additive mask (0 / NEG_BIG) or None.
    """
    dt = W.dtype
    # Main projection on the MXU (f32 accumulation).
    h = jnp.dot(h_act.astype(dt), W, preferred_element_type=jnp.float32)  # (B*N, F)
    # a-vector projections as VPU multiply + lane reduction (XLU slot) instead
    # of two 1-lane-wide MXU matmuls.
    f1 = jnp.sum(h * a1_row, axis=-1, keepdims=True)                      # (B*N, 1)
    f2 = jnp.sum(h * a2_row, axis=-1, keepdims=True)                      # (B*N, 1)

    outs = []
    for b in range(B):                       # B is tiny & static -> unrolled
        sl = slice(b * N, (b + 1) * N)
        e = _leaky_relu(f1[sl] + f2[sl].T)   # (N, N)
        if mask_add is not None:
            e = e + mask_add                 # additive mask (no compare+select)
        e = e - jnp.max(e, axis=-1, keepdims=True)
        p = jnp.exp(e)
        inv = pl.reciprocal(jnp.sum(p, axis=-1, keepdims=True), approx=True)
        att = p * inv
        outs.append(jnp.dot(att.astype(dt), h[sl].astype(dt),
                            preferred_element_type=jnp.float32))
    return _elu(jnp.concatenate(outs, axis=0))               # concat=True -> elu


def mlp_gat_kernel(x_ref, mask_ref, w1_ref, b1_ref, w2_ref, b2_ref,
                   wfc_ref, afc1_ref, afc2_ref, wh_ref, ah1_ref, ah2_ref,
                   o_ref, *, B, N):
    x = x_ref[...]                           # (B*N, FinP), compute dtype
    mask_add = mask_ref[...]                 # (N, N) f32 additive mask

    # mlp1 = Linear + ReLU (batched over all B*N rows).
    h1 = _relu(jnp.dot(x, w1_ref[...], preferred_element_type=jnp.float32)
               + b1_ref[...])                # (B*N, HP) f32
    # att_fc: adj_fc == ones -> no mask; relu(h1) == h1 (relu is idempotent).
    out = _elu(_gat(h1, wfc_ref[...], afc1_ref[...], afc2_ref[...],
                    None, B, N)) + h1

    # mlp2 = Linear + ReLU.
    h2 = _relu(jnp.dot(out.astype(w2_ref.dtype), w2_ref[...],
                       preferred_element_type=jnp.float32) + b2_ref[...])
    out = _elu(_gat(h2, wh_ref[...], ah1_ref[...], ah2_ref[...],
                    mask_add, B, N)) + h2

    o_ref[...] = _relu(out)                  # lane-dense (B*N, OP) f32 store


# ------------------------------- wrapper -------------------------------------

def _round_up(v, m=LANE):
    return ((v + m - 1) // m) * m


def _pad2(a, rows, cols, dtype=None):
    r, c = a.shape
    a = jnp.pad(a, ((0, rows - r), (0, cols - c)))
    return a if dtype is None else a.astype(dtype)


@functools.partial(jax.jit, static_argnames=("compute_dtype",))
def mlp_gat_block(x, adj, w1, b1, w2, b2, wfc, afc, wh, ah,
                  compute_dtype=jnp.float32):
    B, N, Fin = x.shape
    H = w1.shape[1]
    O = w2.shape[1]
    FinP, HP, OP = _round_up(Fin), _round_up(H), _round_up(O)
    BN = B * N

    # Fold the batch, pad the feature (lane) axis to a multiple of 128 and cast
    # the matmul operands to the compute dtype (accumulation stays f32).
    x2d = _pad2(x.reshape(BN, Fin), BN, FinP, compute_dtype)
    mask_add = jnp.where(adj > 0, 0.0, NEG_BIG).astype(jnp.float32)   # (N, N)

    w1p = _pad2(w1, FinP, HP, compute_dtype)
    b1p = _pad2(b1.reshape(1, H), 1, HP, jnp.float32)
    w2p = _pad2(w2, HP, OP, compute_dtype)
    b2p = _pad2(b2.reshape(1, O), 1, OP, jnp.float32)
    wfcp = _pad2(wfc, HP, HP, compute_dtype)
    afc1 = _pad2(afc[:H].T, 1, HP, jnp.float32)
    afc2 = _pad2(afc[H:].T, 1, HP, jnp.float32)
    whp = _pad2(wh, OP, OP, compute_dtype)
    ah1 = _pad2(ah[:O].T, 1, OP, jnp.float32)
    ah2 = _pad2(ah[O:].T, 1, OP, jnp.float32)

    full2 = lambda i: (0, 0)
    in_specs = [
        pl.BlockSpec((BN, FinP), full2),     # x (batch folded, lane-padded)
        pl.BlockSpec((N, N), full2),         # additive adjacency mask
        pl.BlockSpec((FinP, HP), full2),     # W1
        pl.BlockSpec((1, HP), full2),        # b1
        pl.BlockSpec((HP, OP), full2),       # W2
        pl.BlockSpec((1, OP), full2),        # b2
        pl.BlockSpec((HP, HP), full2),       # W of att_fc
        pl.BlockSpec((1, HP), full2),        # a[:H] of att_fc (row)
        pl.BlockSpec((1, HP), full2),        # a[H:] of att_fc (row)
        pl.BlockSpec((OP, OP), full2),       # W of att_hand
        pl.BlockSpec((1, OP), full2),        # a[:O] of att_hand (row)
        pl.BlockSpec((1, OP), full2),        # a[O:] of att_hand (row)
    ]
    out_specs = pl.BlockSpec((BN, OP), full2)

    out = pl.pallas_call(
        functools.partial(mlp_gat_kernel, B=B, N=N),
        out_shape=jax.ShapeDtypeStruct((BN, OP), jnp.float32),
        grid_spec=pltpu.PrefetchScalarGridSpec(
            num_scalar_prefetch=0,
            grid=(1,),                       # whole block fused in one program
            in_specs=in_specs,
            out_specs=out_specs,
        ),
        compiler_params=pltpu.CompilerParams(
            dimension_semantics=("arbitrary",)),
    )(x2d, mask_add, w1p, b1p, w2p, b2p, wfcp, afc1, afc2, whp, ah1, ah2)

    return out[:, :O].reshape(B, N, O)


# ----------------------- pure-JAX reference (for checking) -------------------

def mlp_gat_block_ref(x, adj, w1, b1, w2, b2, wfc, afc, wh, ah,
                      compute_dtype=jnp.float32):
    """Structurally faithful to the PyTorch module; `compute_dtype` emulates the
    kernel's mixed-precision matmul policy (operands in compute_dtype, f32 acc)."""
    dt = compute_dtype

    def cdot(a, b):
        return jnp.dot(a.astype(dt), b.astype(dt),
                       preferred_element_type=jnp.float32)

    def gat(h_in, W, a, adj_, use_mask):
        F = W.shape[1]
        h = cdot(h_in, W)                                    # (B, N, F)
        f1 = jnp.dot(h, a[:F, :])                            # (B, N, 1)
        f2 = jnp.dot(h, a[F:, :])                            # (B, N, 1)
        e = _leaky_relu(f1 + jnp.swapaxes(f2, -1, -2))       # (B, N, N)
        if use_mask:
            e = jnp.where(adj_[None] > 0, e, NEG_BIG)
        att = jax.nn.softmax(e, axis=-1)
        hp = jnp.einsum('bij,bjf->bif', att.astype(dt), h.astype(dt),
                        preferred_element_type=jnp.float32)
        return _elu(hp)                                      # concat=True

    h1 = _relu(cdot(x, w1) + b1)
    out = _elu(gat(_relu(h1), wfc, afc, adj, use_mask=False)) + h1
    h2 = _relu(cdot(out, w2) + b2)
    out = _elu(gat(_relu(h2), wh, ah, adj, use_mask=True)) + h2
    return _relu(out)


# ----------------------------------- main ------------------------------------

def _xavier(key, shape, gain=1.414):
    fan_in, fan_out = shape[0], shape[1]
    limit = gain * jnp.sqrt(6.0 / (fan_in + fan_out))
    return jax.random.uniform(key, shape, jnp.float32, -limit, limit)


if __name__ == "__main__":
    B, N = 2, 8                      # batch, number of graph nodes
    IN_F, HID_F, OUT_F = 16, 32, 32  # in / hidden / out feature dims

    key = jax.random.PRNGKey(0)
    keys = jax.random.split(key, 9)

    x = jax.random.normal(keys[0], (B, N, IN_F), jnp.float32)
    # adjacency: ring + self-loops (deterministic, every row nonempty)
    eye = jnp.eye(N, dtype=jnp.float32)
    adj = jnp.clip(eye + jnp.roll(eye, 1, axis=1) + jnp.roll(eye, -1, axis=1),
                   0.0, 1.0)

    # mlp1 / mlp2 linear layers
    w1 = _xavier(keys[1], (IN_F, HID_F), gain=1.0)
    b1 = jax.random.uniform(keys[2], (1, HID_F), jnp.float32, -0.1, 0.1)
    w2 = _xavier(keys[3], (HID_F, OUT_F), gain=1.0)
    b2 = jax.random.uniform(keys[4], (1, OUT_F), jnp.float32, -0.1, 0.1)

    # GraphAttentionLayer parameters (xavier_uniform, gain=1.414)
    wfc = _xavier(keys[5], (HID_F, HID_F))
    afc = _xavier(keys[6], (2 * HID_F, 1))
    wh = _xavier(keys[7], (OUT_F, OUT_F))
    ah = _xavier(keys[8], (2 * OUT_F, 1))

    args = (x, adj, w1, b1, w2, b2, wfc, afc, wh, ah)

    # f32 path vs. f32 reference (tolerance covers the approximate EUP
    # reciprocal used for the softmax normalization).
    out_f32 = jax.block_until_ready(mlp_gat_block(*args,
                                                  compute_dtype=jnp.float32))
    ref_f32 = mlp_gat_block_ref(*args, compute_dtype=jnp.float32)
    assert out_f32.shape == (B, N, OUT_F)
    assert jnp.allclose(out_f32, ref_f32, atol=2e-2, rtol=2e-2), \
        "f32 kernel mismatch vs reference"

    # bf16 matmul path (unlocks the v6e/v7x MXU rate) vs. a reference that
    # applies the same mixed-precision policy (bf16 operands, f32 accumulation).
    out_bf16 = jax.block_until_ready(mlp_gat_block(*args,
                                                   compute_dtype=jnp.bfloat16))
    ref_bf16 = mlp_gat_block_ref(*args, compute_dtype=jnp.bfloat16)
    assert out_bf16.shape == (B, N, OUT_F)
    assert jnp.allclose(out_bf16, ref_bf16, atol=5e-2, rtol=5e-2), \
        "bf16 kernel mismatch vs mixed-precision reference"

    print("KERNEL_OK")
</pallas_src>

<mosaic_0001>
module attributes {stable_mosaic.version = 11 : i64} {
  func.func @mlp_gat_kernel(%arg0: i32, %arg1: memref<16x128xf32, #tpu.memory_space<vmem>>, %arg2: memref<8x8xf32, #tpu.memory_space<vmem>>, %arg3: memref<128x128xf32, #tpu.memory_space<vmem>>, %arg4: memref<1x128xf32, #tpu.memory_space<vmem>>, %arg5: memref<128x128xf32, #tpu.memory_space<vmem>>, %arg6: memref<1x128xf32, #tpu.memory_space<vmem>>, %arg7: memref<128x128xf32, #tpu.memory_space<vmem>>, %arg8: memref<1x128xf32, #tpu.memory_space<vmem>>, %arg9: memref<1x128xf32, #tpu.memory_space<vmem>>, %arg10: memref<128x128xf32, #tpu.memory_space<vmem>>, %arg11: memref<1x128xf32, #tpu.memory_space<vmem>>, %arg12: memref<1x128xf32, #tpu.memory_space<vmem>>, %arg13: memref<16x128xf32, #tpu.memory_space<vmem>>) attributes {dimension_semantics = [#tpu.dimension_semantics<arbitrary>], iteration_bounds = array<i64: 1>, scalar_prefetch = 0 : i64, scratch_operands = 0 : i64, tpu.core_type = #tpu.core_type<tc>, window_params = [{pipeline_mode = #tpu.pipeline_mode<synchronous>, transform_indices = @transform_0, window_bounds = array<i64: 16, 128>}, {pipeline_mode = #tpu.pipeline_mode<synchronous>, transform_indices = @transform_1, window_bounds = array<i64: 8, 8>}, {pipeline_mode = #tpu.pipeline_mode<synchronous>, transform_indices = @transform_2, window_bounds = array<i64: 128, 128>}, {pipeline_mode = #tpu.pipeline_mode<synchronous>, transform_indices = @transform_3, window_bounds = array<i64: 1, 128>}, {pipeline_mode = #tpu.pipeline_mode<synchronous>, transform_indices = @transform_4, window_bounds = array<i64: 128, 128>}, {pipeline_mode = #tpu.pipeline_mode<synchronous>, transform_indices = @transform_5, window_bounds = array<i64: 1, 128>}, {pipeline_mode = #tpu.pipeline_mode<synchronous>, transform_indices = @transform_6, window_bounds = array<i64: 128, 128>}, {pipeline_mode = #tpu.pipeline_mode<synchronous>, transform_indices = @transform_7, window_bounds = array<i64: 1, 128>}, {pipeline_mode = #tpu.pipeline_mode<synchronous>, transform_indices = @transform_8, window_bounds = array<i64: 1, 128>}, {pipeline_mode = #tpu.pipeline_mode<synchronous>, transform_indices = @transform_9, window_bounds = array<i64: 128, 128>}, {pipeline_mode = #tpu.pipeline_mode<synchronous>, transform_indices = @transform_10, window_bounds = array<i64: 1, 128>}, {pipeline_mode = #tpu.pipeline_mode<synchronous>, transform_indices = @transform_11, window_bounds = array<i64: 1, 128>}, {pipeline_mode = #tpu.pipeline_mode<synchronous>, transform_indices = @transform_12, window_bounds = array<i64: 16, 128>}]} {
    %c0 = arith.constant 0 : index
    %c0_0 = arith.constant 0 : index
    %0 = vector.load %arg1[%c0, %c0_0] : memref<16x128xf32, #tpu.memory_space<vmem>>, vector<16x128xf32>
    %c0_1 = arith.constant 0 : index
    %c0_2 = arith.constant 0 : index
    %1 = vector.load %arg2[%c0_1, %c0_2] : memref<8x8xf32, #tpu.memory_space<vmem>>, vector<8x8xf32>
    %c0_3 = arith.constant 0 : index
    %c0_4 = arith.constant 0 : index
    %2 = vector.load %arg3[%c0_3, %c0_4] : memref<128x128xf32, #tpu.memory_space<vmem>>, vector<128x128xf32>
    %cst = arith.constant dense<0.000000e+00> : vector<16x128xf32>
    %3 = tpu.matmul %0, %2, %cst {dimension_numbers = #tpu.dot_dimension_numbers<[1], [0], [0], [1], [0, 0, 1, 1], [], []>} : vector<16x128xf32>, vector<128x128xf32>, vector<16x128xf32> -> vector<16x128xf32>
    %c0_5 = arith.constant 0 : index
    %c0_6 = arith.constant 0 : index
    %4 = vector.load %arg4[%c0_5, %c0_6] : memref<1x128xf32, #tpu.memory_space<vmem>>, vector<1x128xf32>
    %5 = vector.broadcast %4 : vector<1x128xf32> to vector<16x128xf32>
    %6 = arith.addf %3, %5 : vector<16x128xf32>
    %cst_7 = arith.constant 0.000000e+00 : f32
    %7 = vector.broadcast %cst_7 : f32 to vector<16x128xf32>
    %8 = arith.maximumf %6, %7 : vector<16x128xf32>
    %c0_8 = arith.constant 0 : index
    %c0_9 = arith.constant 0 : index
    %9 = vector.load %arg7[%c0_8, %c0_9] : memref<128x128xf32, #tpu.memory_space<vmem>>, vector<128x128xf32>
    %c0_10 = arith.constant 0 : index
    %c0_11 = arith.constant 0 : index
    %10 = vector.load %arg8[%c0_10, %c0_11] : memref<1x128xf32, #tpu.memory_space<vmem>>, vector<1x128xf32>
    %c0_12 = arith.constant 0 : index
    %c0_13 = arith.constant 0 : index
    %11 = vector.load %arg9[%c0_12, %c0_13] : memref<1x128xf32, #tpu.memory_space<vmem>>, vector<1x128xf32>
    %cst_14 = arith.constant dense<0.000000e+00> : vector<16x128xf32>
    %12 = tpu.matmul %8, %9, %cst_14 {dimension_numbers = #tpu.dot_dimension_numbers<[1], [0], [0], [1], [0, 0, 1, 1], [], []>} : vector<16x128xf32>, vector<128x128xf32>, vector<16x128xf32> -> vector<16x128xf32>
    %13 = vector.broadcast %10 : vector<1x128xf32> to vector<16x128xf32>
    %14 = arith.mulf %12, %13 : vector<16x128xf32>
    %cst_15 = arith.constant dense<0.000000e+00> : vector<16xf32>
    %15 = vector.multi_reduction <add>, %14, %cst_15 [1] : vector<16x128xf32> to vector<16xf32>
    %16 = vector.shape_cast %15 : vector<16xf32> to vector<16x1xf32>
    %17 = vector.broadcast %11 : vector<1x128xf32> to vector<16x128xf32>
    %18 = arith.mulf %12, %17 : vector<16x128xf32>
    %cst_16 = arith.constant dense<0.000000e+00> : vector<16xf32>
    %19 = vector.multi_reduction <add>, %18, %cst_16 [1] : vector<16x128xf32> to vector<16xf32>
    %20 = vector.shape_cast %19 : vector<16xf32> to vector<16x1xf32>
    %21 = vector.extract_strided_slice %16 {offsets = [0, 0], sizes = [8, 1], strides = [1, 1]} : vector<16x1xf32> to vector<8x1xf32>
    %22 = vector.extract_strided_slice %20 {offsets = [0, 0], sizes = [8, 1], strides = [1, 1]} : vector<16x1xf32> to vector<8x1xf32>
    %23 = tpu.transpose %22, [1, 0] : vector<8x1xf32> -> vector<1x8xf32>
    %24 = vector.broadcast %21 : vector<8x1xf32> to vector<8x8xf32>
    %25 = vector.broadcast %23 : vector<1x8xf32> to vector<8x8xf32>
    %26 = arith.addf %24, %25 : vector<8x8xf32>
    %cst_17 = arith.constant 0.000000e+00 : f32
    %27 = vector.broadcast %cst_17 : f32 to vector<8x8xf32>
    %28 = arith.cmpf ogt, %26, %27 : vector<8x8xf32>
    %cst_18 = arith.constant 2.000000e-01 : f32
    %29 = vector.broadcast %cst_18 : f32 to vector<8x8xf32>
    %30 = arith.mulf %29, %26 : vector<8x8xf32>
    %31 = arith.select %28, %26, %30 : vector<8x8xi1>, vector<8x8xf32>
    %cst_19 = arith.constant dense<0xFF800000> : vector<8xf32>
    %32 = vector.multi_reduction <maximumf>, %31, %cst_19 [1] : vector<8x8xf32> to vector<8xf32>
    %33 = vector.shape_cast %32 : vector<8xf32> to vector<8x1xf32>
    %34 = vector.broadcast %33 : vector<8x1xf32> to vector<8x8xf32>
    %35 = arith.subf %31, %34 : vector<8x8xf32>
    %36 = math.exp %35 : vector<8x8xf32>
    %cst_20 = arith.constant dense<0.000000e+00> : vector<8xf32>
    %37 = vector.multi_reduction <add>, %36, %cst_20 [1] : vector<8x8xf32> to vector<8xf32>
    %38 = vector.shape_cast %37 : vector<8xf32> to vector<8x1xf32>
    %39 = tpu.reciprocal %38 {approx = true} : vector<8x1xf32> -> vector<8x1xf32>
    %40 = vector.broadcast %39 : vector<8x1xf32> to vector<8x8xf32>
    %41 = arith.mulf %36, %40 : vector<8x8xf32>
    %42 = vector.extract_strided_slice %12 {offsets = [0, 0], sizes = [8, 128], strides = [1, 1]} : vector<16x128xf32> to vector<8x128xf32>
    %cst_21 = arith.constant dense<0.000000e+00> : vector<8x128xf32>
    %43 = tpu.matmul %41, %42, %cst_21 {dimension_numbers = #tpu.dot_dimension_numbers<[1], [0], [0], [1], [0, 0, 1, 1], [], []>} : vector<8x8xf32>, vector<8x128xf32>, vector<8x128xf32> -> vector<8x128xf32>
    %44 = vector.extract_strided_slice %16 {offsets = [8, 0], sizes = [8, 1], strides = [1, 1]} : vector<16x1xf32> to vector<8x1xf32>
    %45 = vector.extract_strided_slice %20 {offsets = [8, 0], sizes = [8, 1], strides = [1, 1]} : vector<16x1xf32> to vector<8x1xf32>
    %46 = tpu.transpose %45, [1, 0] : vector<8x1xf32> -> vector<1x8xf32>
    %47 = vector.broadcast %44 : vector<8x1xf32> to vector<8x8xf32>
    %48 = vector.broadcast %46 : vector<1x8xf32> to vector<8x8xf32>
    %49 = arith.addf %47, %48 : vector<8x8xf32>
    %cst_22 = arith.constant 0.000000e+00 : f32
    %50 = vector.broadcast %cst_22 : f32 to vector<8x8xf32>
    %51 = arith.cmpf ogt, %49, %50 : vector<8x8xf32>
    %cst_23 = arith.constant 2.000000e-01 : f32
    %52 = vector.broadcast %cst_23 : f32 to vector<8x8xf32>
    %53 = arith.mulf %52, %49 : vector<8x8xf32>
    %54 = arith.select %51, %49, %53 : vector<8x8xi1>, vector<8x8xf32>
    %cst_24 = arith.constant dense<0xFF800000> : vector<8xf32>
    %55 = vector.multi_reduction <maximumf>, %54, %cst_24 [1] : vector<8x8xf32> to vector<8xf32>
    %56 = vector.shape_cast %55 : vector<8xf32> to vector<8x1xf32>
    %57 = vector.broadcast %56 : vector<8x1xf32> to vector<8x8xf32>
    %58 = arith.subf %54, %57 : vector<8x8xf32>
    %59 = math.exp %58 : vector<8x8xf32>
    %cst_25 = arith.constant dense<0.000000e+00> : vector<8xf32>
    %60 = vector.multi_reduction <add>, %59, %cst_25 [1] : vector<8x8xf32> to vector<8xf32>
    %61 = vector.shape_cast %60 : vector<8xf32> to vector<8x1xf32>
    %62 = tpu.reciprocal %61 {approx = true} : vector<8x1xf32> -> vector<8x1xf32>
    %63 = vector.broadcast %62 : vector<8x1xf32> to vector<8x8xf32>
    %64 = arith.mulf %59, %63 : vector<8x8xf32>
    %65 = vector.extract_strided_slice %12 {offsets = [8, 0], sizes = [8, 128], strides = [1, 1]} : vector<16x128xf32> to vector<8x128xf32>
    %cst_26 = arith.constant dense<0.000000e+00> : vector<8x128xf32>
    %66 = tpu.matmul %64, %65, %cst_26 {dimension_numbers = #tpu.dot_dimension_numbers<[1], [0], [0], [1], [0, 0, 1, 1], [], []>} : vector<8x8xf32>, vector<8x128xf32>, vector<8x128xf32> -> vector<8x128xf32>
    %67 = tpu.concatenate %43, %66 in 0 : vector<8x128xf32>, vector<8x128xf32> -> vector<16x128xf32>
    %cst_27 = arith.constant 0.000000e+00 : f32
    %68 = vector.broadcast %cst_27 : f32 to vector<16x128xf32>
    %69 = arith.cmpf ogt, %67, %68 : vector<16x128xf32>
    %70 = math.exp %67 : vector<16x128xf32>
    %cst_28 = arith.constant 1.000000e+00 : f32
    %71 = vector.broadcast %cst_28 : f32 to vector<16x128xf32>
    %72 = arith.subf %70, %71 : vector<16x128xf32>
    %73 = arith.select %69, %67, %72 : vector<16x128xi1>, vector<16x128xf32>
    %cst_29 = arith.constant 0.000000e+00 : f32
    %74 = vector.broadcast %cst_29 : f32 to vector<16x128xf32>
    %75 = arith.cmpf ogt, %73, %74 : vector<16x128xf32>
    %76 = math.exp %73 : vector<16x128xf32>
    %cst_30 = arith.constant 1.000000e+00 : f32
    %77 = vector.broadcast %cst_30 : f32 to vector<16x128xf32>
    %78 = arith.subf %76, %77 : vector<16x128xf32>
    %79 = arith.select %75, %73, %78 : vector<16x128xi1>, vector<16x128xf32>
    %80 = arith.addf %79, %8 : vector<16x128xf32>
    %c0_31 = arith.constant 0 : index
    %c0_32 = arith.constant 0 : index
    %81 = vector.load %arg5[%c0_31, %c0_32] : memref<128x128xf32, #tpu.memory_space<vmem>>, vector<128x128xf32>
    %cst_33 = arith.constant dense<0.000000e+00> : vector<16x128xf32>
    %82 = tpu.matmul %80, %81, %cst_33 {dimension_numbers = #tpu.dot_dimension_numbers<[1], [0], [0], [1], [0, 0, 1, 1], [], []>} : vector<16x128xf32>, vector<128x128xf32>, vector<16x128xf32> -> vector<16x128xf32>
    %c0_34 = arith.constant 0 : index
    %c0_35 = arith.constant 0 : index
    %83 = vector.load %arg6[%c0_34, %c0_35] : memref<1x128xf32, #tpu.memory_space<vmem>>, vector<1x128xf32>
    %84 = vector.broadcast %83 : vector<1x128xf32> to vector<16x128xf32>
    %85 = arith.addf %82, %84 : vector<16x128xf32>
    %cst_36 = arith.constant 0.000000e+00 : f32
    %86 = vector.broadcast %cst_36 : f32 to vector<16x128xf32>
    %87 = arith.maximumf %85, %86 : vector<16x128xf32>
    %c0_37 = arith.constant 0 : index
    %c0_38 = arith.constant 0 : index
    %88 = vector.load %arg10[%c0_37, %c0_38] : memref<128x128xf32, #tpu.memory_space<vmem>>, vector<128x128xf32>
    %c0_39 = arith.constant 0 : index
    %c0_40 = arith.constant 0 : index
    %89 = vector.load %arg11[%c0_39, %c0_40] : memref<1x128xf32, #tpu.memory_space<vmem>>, vector<1x128xf32>
    %c0_41 = arith.constant 0 : index
    %c0_42 = arith.constant 0 : index
    %90 = vector.load %arg12[%c0_41, %c0_42] : memref<1x128xf32, #tpu.memory_space<vmem>>, vector<1x128xf32>
    %cst_43 = arith.constant dense<0.000000e+00> : vector<16x128xf32>
    %91 = tpu.matmul %87, %88, %cst_43 {dimension_numbers = #tpu.dot_dimension_numbers<[1], [0], [0], [1], [0, 0, 1, 1], [], []>} : vector<16x128xf32>, vector<128x128xf32>, vector<16x128xf32> -> vector<16x128xf32>
    %92 = vector.broadcast %89 : vector<1x128xf32> to vector<16x128xf32>
    %93 = arith.mulf %91, %92 : vector<16x128xf32>
    %cst_44 = arith.constant dense<0.000000e+00> : vector<16xf32>
    %94 = vector.multi_reduction <add>, %93, %cst_44 [1] : vector<16x128xf32> to vector<16xf32>
    %95 = vector.shape_cast %94 : vector<16xf32> to vector<16x1xf32>
    %96 = vector.broadcast %90 : vector<1x128xf32> to vector<16x128xf32>
    %97 = arith.mulf %91, %96 : vector<16x128xf32>
    %cst_45 = arith.constant dense<0.000000e+00> : vector<16xf32>
    %98 = vector.multi_reduction <add>, %97, %cst_45 [1] : vector<16x128xf32> to vector<16xf32>
    %99 = vector.shape_cast %98 : vector<16xf32> to vector<16x1xf32>
    %100 = vector.extract_strided_slice %95 {offsets = [0, 0], sizes = [8, 1], strides = [1, 1]} : vector<16x1xf32> to vector<8x1xf32>
    %101 = vector.extract_strided_slice %99 {offsets = [0, 0], sizes = [8, 1], strides = [1, 1]} : vector<16x1xf32> to vector<8x1xf32>
    %102 = tpu.transpose %101, [1, 0] : vector<8x1xf32> -> vector<1x8xf32>
    %103 = vector.broadcast %100 : vector<8x1xf32> to vector<8x8xf32>
    %104 = vector.broadcast %102 : vector<1x8xf32> to vector<8x8xf32>
    %105 = arith.addf %103, %104 : vector<8x8xf32>
    %cst_46 = arith.constant 0.000000e+00 : f32
    %106 = vector.broadcast %cst_46 : f32 to vector<8x8xf32>
    %107 = arith.cmpf ogt, %105, %106 : vector<8x8xf32>
    %cst_47 = arith.constant 2.000000e-01 : f32
    %108 = vector.broadcast %cst_47 : f32 to vector<8x8xf32>
    %109 = arith.mulf %108, %105 : vector<8x8xf32>
    %110 = arith.select %107, %105, %109 : vector<8x8xi1>, vector<8x8xf32>
    %111 = arith.addf %110, %1 : vector<8x8xf32>
    %cst_48 = arith.constant dense<0xFF800000> : vector<8xf32>
    %112 = vector.multi_reduction <maximumf>, %111, %cst_48 [1] : vector<8x8xf32> to vector<8xf32>
    %113 = vector.shape_cast %112 : vector<8xf32> to vector<8x1xf32>
    %114 = vector.broadcast %113 : vector<8x1xf32> to vector<8x8xf32>
    %115 = arith.subf %111, %114 : vector<8x8xf32>
    %116 = math.exp %115 : vector<8x8xf32>
    %cst_49 = arith.constant dense<0.000000e+00> : vector<8xf32>
    %117 = vector.multi_reduction <add>, %116, %cst_49 [1] : vector<8x8xf32> to vector<8xf32>
    %118 = vector.shape_cast %117 : vector<8xf32> to vector<8x1xf32>
    %119 = tpu.reciprocal %118 {approx = true} : vector<8x1xf32> -> vector<8x1xf32>
    %120 = vector.broadcast %119 : vector<8x1xf32> to vector<8x8xf32>
    %121 = arith.mulf %116, %120 : vector<8x8xf32>
    %122 = vector.extract_strided_slice %91 {offsets = [0, 0], sizes = [8, 128], strides = [1, 1]} : vector<16x128xf32> to vector<8x128xf32>
    %cst_50 = arith.constant dense<0.000000e+00> : vector<8x128xf32>
    %123 = tpu.matmul %121, %122, %cst_50 {dimension_numbers = #tpu.dot_dimension_numbers<[1], [0], [0], [1], [0, 0, 1, 1], [], []>} : vector<8x8xf32>, vector<8x128xf32>, vector<8x128xf32> -> vector<8x128xf32>
    %124 = vector.extract_strided_slice %95 {offsets = [8, 0], sizes = [8, 1], strides = [1, 1]} : vector<16x1xf32> to vector<8x1xf32>
    %125 = vector.extract_strided_slice %99 {offsets = [8, 0], sizes = [8, 1], strides = [1, 1]} : vector<16x1xf32> to vector<8x1xf32>
    %126 = tpu.transpose %125, [1, 0] : vector<8x1xf32> -> vector<1x8xf32>
    %127 = vector.broadcast %124 : vector<8x1xf32> to vector<8x8xf32>
    %128 = vector.broadcast %126 : vector<1x8xf32> to vector<8x8xf32>
    %129 = arith.addf %127, %128 : vector<8x8xf32>
    %cst_51 = arith.constant 0.000000e+00 : f32
    %130 = vector.broadcast %cst_51 : f32 to vector<8x8xf32>
    %131 = arith.cmpf ogt, %129, %130 : vector<8x8xf32>
    %cst_52 = arith.constant 2.000000e-01 : f32
    %132 = vector.broadcast %cst_52 : f32 to vector<8x8xf32>
    %133 = arith.mulf %132, %129 : vector<8x8xf32>
    %134 = arith.select %131, %129, %133 : vector<8x8xi1>, vector<8x8xf32>
    %135 = arith.addf %134, %1 : vector<8x8xf32>
    %cst_53 = arith.constant dense<0xFF800000> : vector<8xf32>
    %136 = vector.multi_reduction <maximumf>, %135, %cst_53 [1] : vector<8x8xf32> to vector<8xf32>
    %137 = vector.shape_cast %136 : vector<8xf32> to vector<8x1xf32>
    %138 = vector.broadcast %137 : vector<8x1xf32> to vector<8x8xf32>
    %139 = arith.subf %135, %138 : vector<8x8xf32>
    %140 = math.exp %139 : vector<8x8xf32>
    %cst_54 = arith.constant dense<0.000000e+00> : vector<8xf32>
    %141 = vector.multi_reduction <add>, %140, %cst_54 [1] : vector<8x8xf32> to vector<8xf32>
    %142 = vector.shape_cast %141 : vector<8xf32> to vector<8x1xf32>
    %143 = tpu.reciprocal %142 {approx = true} : vector<8x1xf32> -> vector<8x1xf32>
    %144 = vector.broadcast %143 : vector<8x1xf32> to vector<8x8xf32>
    %145 = arith.mulf %140, %144 : vector<8x8xf32>
    %146 = vector.extract_strided_slice %91 {offsets = [8, 0], sizes = [8, 128], strides = [1, 1]} : vector<16x128xf32> to vector<8x128xf32>
    %cst_55 = arith.constant dense<0.000000e+00> : vector<8x128xf32>
    %147 = tpu.matmul %145, %146, %cst_55 {dimension_numbers = #tpu.dot_dimension_numbers<[1], [0], [0], [1], [0, 0, 1, 1], [], []>} : vector<8x8xf32>, vector<8x128xf32>, vector<8x128xf32> -> vector<8x128xf32>
    %148 = tpu.concatenate %123, %147 in 0 : vector<8x128xf32>, vector<8x128xf32> -> vector<16x128xf32>
    %cst_56 = arith.constant 0.000000e+00 : f32
    %149 = vector.broadcast %cst_56 : f32 to vector<16x128xf32>
    %150 = arith.cmpf ogt, %148, %149 : vector<16x128xf32>
    %151 = math.exp %148 : vector<16x128xf32>
    %cst_57 = arith.constant 1.000000e+00 : f32
    %152 = vector.broadcast %cst_57 : f32 to vector<16x128xf32>
    %153 = arith.subf %151, %152 : vector<16x128xf32>
    %154 = arith.select %150, %148, %153 : vector<16x128xi1>, vector<16x128xf32>
    %cst_58 = arith.constant 0.000000e+00 : f32
    %155 = vector.broadcast %cst_58 : f32 to vector<16x128xf32>
    %156 = arith.cmpf ogt, %154, %155 : vector<16x128xf32>
    %157 = math.exp %154 : vector<16x128xf32>
    %cst_59 = arith.constant 1.000000e+00 : f32
    %158 = vector.broadcast %cst_59 : f32 to vector<16x128xf32>
    %159 = arith.subf %157, %158 : vector<16x128xf32>
    %160 = arith.select %156, %154, %159 : vector<16x128xi1>, vector<16x128xf32>
    %161 = arith.addf %160, %87 : vector<16x128xf32>
    %cst_60 = arith.constant 0.000000e+00 : f32
    %162 = vector.broadcast %cst_60 : f32 to vector<16x128xf32>
    %163 = arith.maximumf %161, %162 : vector<16x128xf32>
    %c0_61 = arith.constant 0 : index
    %c0_62 = arith.constant 0 : index
    %164 = vector.load %arg13[%c0_61, %c0_62] : memref<16x128xf32, #tpu.memory_space<vmem>>, vector<16x128xf32>
    tpu.vector_store %arg13[%c0_61, %c0_62], %163 {strides = array<i32>} : memref<16x128xf32, #tpu.memory_space<vmem>>, vector<16x128xf32>,
    return
  }
  func.func @transform_0(%arg0: i32) -> (i32, i32) {
    %c0_i32 = arith.constant 0 : i32
    %c0_i32_0 = arith.constant 0 : i32
    %c0_i32_1 = arith.constant 0 : i32
    return %c0_i32, %c0_i32_0 : i32, i32
  }
  func.func @transform_1(%arg0: i32) -> (i32, i32) {
    %c0_i32 = arith.constant 0 : i32
    %c0_i32_0 = arith.constant 0 : i32
    %c0_i32_1 = arith.constant 0 : i32
    return %c0_i32, %c0_i32_0 : i32, i32
  }
  func.func @transform_2(%arg0: i32) -> (i32, i32) {
    %c0_i32 = arith.constant 0 : i32
    %c0_i32_0 = arith.constant 0 : i32
    %c0_i32_1 = arith.constant 0 : i32
    return %c0_i32, %c0_i32_0 : i32, i32
  }
  func.func @transform_3(%arg0: i32) -> (i32, i32) {
    %c0_i32 = arith.constant 0 : i32
    %c0_i32_0 = arith.constant 0 : i32
    %c0_i32_1 = arith.constant 0 : i32
    return %c0_i32, %c0_i32_0 : i32, i32
  }
  func.func @transform_4(%arg0: i32) -> (i32, i32) {
    %c0_i32 = arith.constant 0 : i32
    %c0_i32_0 = arith.constant 0 : i32
    %c0_i32_1 = arith.constant 0 : i32
    return %c0_i32, %c0_i32_0 : i32, i32
  }
  func.func @transform_5(%arg0: i32) -> (i32, i32) {
    %c0_i32 = arith.constant 0 : i32
    %c0_i32_0 = arith.constant 0 : i32
    %c0_i32_1 = arith.constant 0 : i32
    return %c0_i32, %c0_i32_0 : i32, i32
  }
  func.func @transform_6(%arg0: i32) -> (i32, i32) {
    %c0_i32 = arith.constant 0 : i32
    %c0_i32_0 = arith.constant 0 : i32
    %c0_i32_1 = arith.constant 0 : i32
    return %c0_i32, %c0_i32_0 : i32, i32
  }
  func.func @transform_7(%arg0: i32) -> (i32, i32) {
    %c0_i32 = arith.constant 0 : i32
    %c0_i32_0 = arith.constant 0 : i32
    %c0_i32_1 = arith.constant 0 : i32
    return %c0_i32, %c0_i32_0 : i32, i32
  }
  func.func @transform_8(%arg0: i32) -> (i32, i32) {
    %c0_i32 = arith.constant 0 : i32
    %c0_i32_0 = arith.constant 0 : i32
    %c0_i32_1 = arith.constant 0 : i32
    return %c0_i32, %c0_i32_0 : i32, i32
  }
  func.func @transform_9(%arg0: i32) -> (i32, i32) {
    %c0_i32 = arith.constant 0 : i32
    %c0_i32_0 = arith.constant 0 : i32
    %c0_i32_1 = arith.constant 0 : i32
    return %c0_i32, %c0_i32_0 : i32, i32
  }
  func.func @transform_10(%arg0: i32) -> (i32, i32) {
    %c0_i32 = arith.constant 0 : i32
    %c0_i32_0 = arith.constant 0 : i32
    %c0_i32_1 = arith.constant 0 : i32
    return %c0_i32, %c0_i32_0 : i32, i32
  }
  func.func @transform_11(%arg0: i32) -> (i32, i32) {
    %c0_i32 = arith.constant 0 : i32
    %c0_i32_0 = arith.constant 0 : i32
    %c0_i32_1 = arith.constant 0 : i32
    return %c0_i32, %c0_i32_0 : i32, i32
  }
  func.func @transform_12(%arg0: i32) -> (i32, i32) {
    %c0_i32 = arith.constant 0 : i32
    %c0_i32_0 = arith.constant 0 : i32
    %c0_i32_1 = arith.constant 0 : i32
    return %c0_i32, %c0_i32_0 : i32, i32
  }
}

</mosaic_0001>

<bundles_post_ra>
// kernel: mlp_gat_block.1
= control target key start
LH: loop header
LB: loop body
LE: loop exit
PB: predicated region body
PF: predicated region fallthrough
CT: control target
= control target key end

     0   :  { %v1321_v41 = vmov 0.0   ;;  %v293_v52 = vlaneseq  ;;  %vm301_vm1 = vcmask 64512   ;;  %vm1322_vm3 = vmmov 0   ;;  %s1671_s2 = inlined_call_operand.vmem [shape: f32[128,128], index: 2, kind: input, shape index: {}]   ;;  %s1672_s0 = inlined_call_operand.vmem [shape: f32[16,128], index: 0, kind: input, shape index: {}]   ;;  %s1673_s6 = inlined_call_operand.vmem [shape: f32[128,128], index: 6, kind: input, shape index: {}]   ;;  %s1674_s3 = inlined_call_operand.vmem [shape: f32[1,128], index: 3, kind: input, shape index: {}]   ;;  %s1675_s7 = inlined_call_operand.vmem [shape: f32[1,128], index: 7, kind: input, shape index: {}]   ;;  %s1676_s8 = inlined_call_operand.vmem [shape: f32[1,128], index: 8, kind: input, shape index: {}]   ;;  %s1677_s4 = inlined_call_operand.vmem [shape: f32[128,128], index: 4, kind: input, shape index: {}]   ;;  %s1678_s9 = inlined_call_operand.vmem [shape: f32[128,128], index: 9, kind: input, shape index: {}]   ;;  %s1679_s5 = inlined_call_operand.vmem [shape: f32[1,128], index: 5, kind: input, shape index: {}]   ;;  %s1680_s11 = inlined_call_operand.vmem [shape: f32[1,128], index: 11, kind: input, shape index: {}]   ;;  %s1681_s10 = inlined_call_operand.vmem [shape: f32[1,128], index: 10, kind: input, shape index: {}]   ;;  %s1682_s1 = inlined_call_operand.vmem [shape: f32[8,8], index: 1, kind: input, shape index: {}]   ;;  %s1683_s12 = inlined_call_operand.vmem [shape: f32[16,128], index: 12, kind: output, shape index: {}]  }
   0x1   :  { %v59_v0 = vld [vmem:[%s1671_s2 + $0x78] sm:$0xff]  ;;  %v58_v1 = vld [vmem:[%s1671_s2 + $0x70] sm:$0xff]  ;;  %v57_v2 = vld [vmem:[%s1671_s2 + $0x68] sm:$0xff] }
   0x2   :  { %1127 = vmatprep.subr.mxu0 %v59_v0  ;;  %v56_v3 = vld [vmem:[%s1671_s2 + $0x60] sm:$0xff]  ;;  %v55_v5 = vld [vmem:[%s1671_s2 + $0x58] sm:$0xff]  ;;  %v158_v7 = vld [vmem:[%s1673_s6 + $0x70] sm:$0xff]  ;;  %v294_v53 = vshrl.u32 %v293_v52, 7 }
   0x3   :  { %1128 = vmatpush3.msra.mxu0 %v59_v0  ;;  %v41_v4 = vld [vmem:[%s1672_s0] sm:$0xff]  ;;  %v159_v6 = vld [vmem:[%s1673_s6 + $0x78] sm:$0xff]  ;;  %v54_v8 = vld [vmem:[%s1671_s2 + $0x50] sm:$0xff] }
   0x4   :  { %1129 = vmatprep.subr.mxu0 %v58_v1  ;;  %1159 = vmatprep.mubr.f32.mxu0 %v41_v4  ;;  %v157_v9 = vld [vmem:[%s1673_s6 + $0x68] sm:$0xff]  ;;  %v156_v11 = vld [vmem:[%s1673_s6 + $0x60] sm:$0xff]  ;;  %v155_v13 = vld [vmem:[%s1673_s6 + $0x58] sm:$0xff]  ;;  %v1511_v55 = vsub.s32 0, %v294_v53 }
   0x5   :  { %1130 = vmatpush3.msra.mxu0 %v58_v1  ;;  %1162 = vmatprep.subr.mxu1 %v159_v6  ;;  %v53_v10 = vld [vmem:[%s1671_s2 + $0x48] sm:$0xff]  ;;  %v52_v12 = vld [vmem:[%s1671_s2 + $0x40] sm:$0xff]  ;;  %v51_v14 = vld [vmem:[%s1671_s2 + $0x38] sm:$0xff] }
   0x6   :  { %1131 = vmatprep.subr.mxu0 %v57_v2  ;;  %1163 = vmatpush3.msra.mxu1 %v159_v6  ;;  %v154_v15 = vld [vmem:[%s1673_s6 + $0x50] sm:$0xff]  ;;  %v153_v17 = vld [vmem:[%s1673_s6 + $0x48] sm:$0xff]  ;;  %v152_v19 = vld [vmem:[%s1673_s6 + $0x40] sm:$0xff] }
   0x7   :  { %1132 = vmatpush3.msra.mxu0 %v57_v2  ;;  %1164 = vmatprep.subr.mxu1 %v158_v7  ;;  %v50_v16 = vld [vmem:[%s1671_s2 + $0x30] sm:$0xff]  ;;  %v49_v18 = vld [vmem:[%s1671_s2 + $0x28] sm:$0xff]  ;;  %v48_v20 = vld [vmem:[%s1671_s2 + $0x20] sm:$0xff] }
   0x8   :  { %1133 = vmatprep.subr.mxu0 %v56_v3  ;;  %1165 = vmatpush3.msra.mxu1 %v158_v7  ;;  %v151_v21 = vld [vmem:[%s1673_s6 + $0x38] sm:$0xff]  ;;  %v150_v23 = vld [vmem:[%s1673_s6 + $0x30] sm:$0xff]  ;;  %v149_v25 = vld [vmem:[%s1673_s6 + $0x28] sm:$0xff] }
   0x9   :  { %1134 = vmatpush3.msra.mxu0 %v56_v3  ;;  %1166 = vmatprep.subr.mxu1 %v157_v9  ;;  %v47_v22 = vld [vmem:[%s1671_s2 + $0x18] sm:$0xff]  ;;  %v46_v24 = vld [vmem:[%s1671_s2 + $0x10] sm:$0xff]  ;;  %v45_v26 = vld [vmem:[%s1671_s2 + $0x8] sm:$0xff] }
   0xa   :  { %1135 = vmatprep.subr.mxu0 %v55_v5  ;;  %1167 = vmatpush3.msra.mxu1 %v157_v9  ;;  %v148_v27 = vld [vmem:[%s1673_s6 + $0x20] sm:$0xff]  ;;  %v42_v29 = vld [vmem:[%s1672_s0 + $0x8] sm:$0xff]  ;;  %v147_v30 = vld [vmem:[%s1673_s6 + $0x18] sm:$0xff] }
   0xb   :  { %1136 = vmatpush3.msra.mxu0 %v55_v5  ;;  %1168 = vmatprep.subr.mxu1 %v156_v11  ;;  %v44_v28 = vld [vmem:[%s1671_s2] sm:$0xff]  ;;  %v146_v31 = vld [vmem:[%s1673_s6 + $0x10] sm:$0xff]  ;;  %v145_v32 = vld [vmem:[%s1673_s6 + $0x8] sm:$0xff] }
   0xc   :  { %1137 = vmatprep.subr.mxu0 %v54_v8  ;;  %1169 = vmatpush3.msra.mxu1 %v156_v11  ;;  %v144_v33 = vld [vmem:[%s1673_s6] sm:$0xff]  ;;  %v637_v52 = vld [vmem:[%s1678_s9 + $0x28] sm:$0xff] }
   0xd   :  { %1138 = vmatpush3.msra.mxu0 %v54_v8  ;;  %1170 = vmatprep.subr.mxu1 %v155_v13  ;;  %v1029_v34 = vld [vmem:[%s1674_s3] ss:$0 sm:$0xff] }
   0xe   :  { %1139 = vmatprep.subr.mxu0 %v53_v10  ;;  %1171 = vmatpush3.msra.mxu1 %v155_v13  ;;  %v1030_v42 = vld [vmem:[%s1675_s7] ss:$0 sm:$0xff] }
   0xf   :  { %1140 = vmatpush3.msra.mxu0 %v53_v10  ;;  %1172 = vmatprep.subr.mxu1 %v154_v15  ;;  %v1031_v46 = vld [vmem:[%s1676_s8] ss:$0 sm:$0xff] }
  0x10   :  { %1141 = vmatprep.subr.mxu0 %v52_v12  ;;  %1173 = vmatpush3.msra.mxu1 %v154_v15  ;;  %v636_v53 = vld [vmem:[%s1678_s9 + $0x20] sm:$0xff] }
  0x11   :  { %1142 = vmatpush3.msra.mxu0 %v52_v12  ;;  %1174 = vmatprep.subr.mxu1 %v153_v17 }
  0x12   :  { %1143 = vmatprep.subr.mxu0 %v51_v14  ;;  %1175 = vmatpush3.msra.mxu1 %v153_v17 }
  0x13   :  { %1144 = vmatpush3.msra.mxu0 %v51_v14  ;;  %1176 = vmatprep.subr.mxu1 %v152_v19 }
  0x14   :  { %1145 = vmatprep.subr.mxu0 %v50_v16  ;;  %1177 = vmatpush3.msra.mxu1 %v152_v19 }
  0x15   :  { %1146 = vmatpush3.msra.mxu0 %v50_v16  ;;  %1178 = vmatprep.subr.mxu1 %v151_v21 }
  0x16   :  { %1147 = vmatprep.subr.mxu0 %v49_v18  ;;  %1179 = vmatpush3.msra.mxu1 %v151_v21  ;;  %v547_v21 = vld [vmem:[%s1677_s4 + $0x78] sm:$0xff] }
  0x17   :  { %1148 = vmatpush3.msra.mxu0 %v49_v18  ;;  %1180 = vmatprep.subr.mxu1 %v150_v23 }
  0x18   :  { %1149 = vmatprep.subr.mxu0 %v48_v20  ;;  %1181 = vmatpush3.msra.mxu1 %v150_v23  ;;  %v545_v23 = vld [vmem:[%s1677_s4 + $0x68] sm:$0xff] }
  0x19   :  { %1150 = vmatpush3.msra.mxu0 %v48_v20  ;;  %1182 = vmatprep.subr.mxu1 %v149_v25 }
  0x1a   :  { %1151 = vmatprep.subr.mxu0 %v47_v22  ;;  %1183 = vmatpush3.msra.mxu1 %v149_v25  ;;  %v543_v25 = vld [vmem:[%s1677_s4 + $0x58] sm:$0xff] }
  0x1b   :  { %1152 = vmatpush3.msra.mxu0 %v47_v22  ;;  %1184 = vmatprep.subr.mxu1 %v148_v27  ;;  %v546_v22 = vld [vmem:[%s1677_s4 + $0x70] sm:$0xff] }
  0x1c   :  { %1153 = vmatprep.subr.mxu0 %v46_v24  ;;  %1185 = vmatpush3.msra.mxu1 %v148_v27  ;;  %v541_v27 = vld [vmem:[%s1677_s4 + $0x48] sm:$0xff] }
  0x1d   :  { %1154 = vmatpush3.msra.mxu0 %v46_v24  ;;  %1186 = vmatprep.subr.mxu1 %v147_v30  ;;  %v544_v24 = vld [vmem:[%s1677_s4 + $0x60] sm:$0xff] }
  0x1e   :  { %1155 = vmatprep.subr.mxu0 %v45_v26  ;;  %1187 = vmatpush3.msra.mxu1 %v147_v30  ;;  %v538_v30 = vld [vmem:[%s1677_s4 + $0x30] sm:$0xff] }
  0x1f   :  { %1156 = vmatpush3.msra.mxu0 %v45_v26  ;;  %1188 = vmatprep.subr.mxu1 %v146_v31  ;;  %v542_v26 = vld [vmem:[%s1677_s4 + $0x50] sm:$0xff] }
  0x20   :  { %1157 = vmatprep.subr.mxu0 %v44_v28  ;;  %1189 = vmatpush3.msra.mxu1 %v146_v31  ;;  %v537_v31 = vld [vmem:[%s1677_s4 + $0x28] sm:$0xff] }
  0x21   :  { %1158 = vmatpush3.msra.mxu0 %v44_v28  ;;  %1190 = vmatprep.subr.mxu1 %v145_v32  ;;  %v540_v28 = vld [vmem:[%s1677_s4 + $0x40] sm:$0xff] }
  0x22   :  { %1160 = vmatmul.mubr.f32.vlgmr.msra.gmra.mxu0 %v42_v29  ;;  %1191 = vmatpush3.msra.mxu1 %v145_v32  ;;  %v539_v29 = vld [vmem:[%s1677_s4 + $0x38] sm:$0xff]  ;;  %v536_v32 = vld [vmem:[%s1677_s4 + $0x20] sm:$0xff] }
  0x23   :  { %1192 = vmatprep.subr.mxu1 %v144_v33  ;;  %1197 = vmatprep.subr.mxu0 %v1321_v41 }
  0x24   :  { %1193 = vmatpush3.msra.mxu1 %v144_v33  ;;  %1199 = vmatprep.mubr.msk.f32.mxu0 %vm1322_vm3, %v1321_v41  ;;  %v535_v33 = vld [vmem:[%s1677_s4 + $0x18] sm:$0xff] }
  0x25   :  { %1202 = vmatprep.subr.mxu1 %v1321_v41 }
  0xe2   :  { %v1161_v35 = vpop.f32.mrf.mxu0 }
  0xe3   :  { %v1493_v36 = vadd.f32 %v1161_v35, %v1029_v34  ;;  %v533_v35 = vld [vmem:[%s1677_s4 + $0x8] sm:$0xff] }
  0xe4   :  { %v133_v37 = vpop.f32.mrf.mxu0 }
  0xe5   :  { %v1495_v38 = vadd.f32 %v1029_v34, %v133_v37  ;;  %v143_v40 = vmax.f32 %v1493_v36, 0.0  ;;  %v534_v34 = vld [vmem:[%s1677_s4 + $0x10] sm:$0xff]  ;;  %v532_v37 = vld [vmem:[%s1677_s4] sm:$0xff]  ;;  %v633_v36 = vld [vmem:[%s1678_s9 + $0x8] sm:$0xff] }
  0xe7   :  { %v142_v39 = vmax.f32 %v1495_v38, 0.0  ;;  %v634_v38 = vld [vmem:[%s1678_s9 + $0x10] sm:$0xff] }
  0xe9   :  { %1194 = vmatprep.mubr.f32.mxu1 %v142_v39 }
  0xea   :  { %1195 = vmatmul.mubr.f32.vlgmr.msra.gmra.mxu1 %v143_v40 }
  0xeb   :  { %1204 = vmatprep.mubr.msk.f32.mxu1 %vm1322_vm3, %v1321_v41 }
 0x1aa   :  { %v1196_v43 = vpop.f32.mrf.mxu1 }
 0x1ab   :  { %1203 = vmatpush3.msra.mxu1 %v1196_v43  ;;  %v244_v44 = vmul.f32 %v1196_v43, %v1030_v42  ;;  %v256_v49 = vmul.f32 %v1196_v43, %v1031_v46  ;;  %v646_v43 = vld [vmem:[%s1678_s9 + $0x70] sm:$0xff] }
 0x1ac   :  { %v228_v45 = vpop.f32.mrf.mxu1 }
 0x1ad   :  { %247 = vadd.xlane.f32.xlu1 %v244_v44  ;;  %1198 = vmatpush3.msra.mxu0 %v228_v45  ;;  %v255_v47 = vmul.f32 %v1031_v46, %v228_v45  ;;  %v243_v48 = vmul.f32 %v1030_v42, %v228_v45  ;;  %v647_v42 = vld [vmem:[%s1678_s9 + $0x78] sm:$0xff]  ;;  %v645_v44 = vld [vmem:[%s1678_s9 + $0x68] sm:$0xff]  ;;  %v644_v45 = vld [vmem:[%s1678_s9 + $0x60] sm:$0xff] }
 0x1ae   :  { %1207 = vmatprep.subr.mxu0 %v547_v21  ;;  %1242 = vmatprep.subr.mxu1 %v647_v42  ;;  %v643_v46 = vld [vmem:[%s1678_s9 + $0x58] sm:$0xff] }
 0x1af   :  { %257 = vadd.xlane.f32.xlu0 %v255_v47  ;;  %v642_v47 = vld [vmem:[%s1678_s9 + $0x50] sm:$0xff] }
 0x1b1   :  { %245 = vadd.xlane.f32.xlu1 %v243_v48  ;;  %v641_v48 = vld [vmem:[%s1678_s9 + $0x48] sm:$0xff] }
 0x1b3   :  { %259 = vadd.xlane.f32.xlu0 %v256_v49  ;;  %v640_v49 = vld [vmem:[%s1678_s9 + $0x40] sm:$0xff] }
 0x236   :  { %v248_v54 = vpop.xlane.xlu1 %247 }
 0x238   :  { %v258_v50 = vpop.xlane.xlu0 %257 }
 0x239   :  { %261 = vxpose.xlu0.b32.start.end [1/1] (short) (narrow) %v258_v50, 8  ;;  %v639_v50 = vld [vmem:[%s1678_s9 + $0x38] sm:$0xff] }
 0x23a   :  { %v246_v56 = vpop.xlane.xlu1 %245 }
 0x23c   :  { %v260_v51 = vpop.xlane.xlu0 %259 }
 0x23d   :  { %386 = vxpose.xlu1.b32.start.end [1/1] (short) (narrow) %v260_v51, 8  ;;  %v638_v51 = vld [vmem:[%s1678_s9 + $0x30] sm:$0xff] }
 0x2b5   :  { %v277_v57 = vpop.trf.xlu0 }
 0x2b6   :  { %v296_v58 = vrot.slane %v277_v57, %v1511_v55 }
 0x2b8   :  { %v297_v59 = vadd.f32 %v296_v58, %v246_v56 }
 0x2b9   :  { %v402_v60 = vpop.trf.xlu1 }
 0x2ba   :  { %v421_v61 = vrot.slane %v402_v60, %v1511_v55  ;;  %vm298_vm0 = vcmp.gt.f32.partialorder %v297_v59, 0.0  ;;  %v299_v62 = vmul.f32 0.2, %v297_v59 }
 0x2bc   :  { %v422_v63 = vadd.f32 %v421_v61, %v248_v54  ;;  %v300_v0 = vsel %vm298_vm0, %v297_v59, %v299_v62 }
 0x2bd   :  { %v302_v1 = vsel %vm301_vm1, %v300_v0, -inf }
 0x2be   :  { %303 = vmax.xlane.f32.xlu0 %v302_v1  ;;  %vm423_vm2 = vcmp.gt.f32.partialorder %v422_v63, 0.0  ;;  %v424_v2 = vmul.f32 0.2, %v422_v63 }
 0x2c0   :  { %v425_v3 = vsel %vm423_vm2, %v422_v63, %v424_v2 }
 0x2c1   :  { %v426_v4 = vsel %vm301_vm1, %v425_v3, -inf }
 0x2c2   :  { %427 = vmax.xlane.f32.xlu1 %v426_v4 }
 0x347   :  { %v304_v5 = vpop.xlane.xlu0 %303 }
 0x348   :  { %v305_v6 = vsub.f32 %v300_v0, %v304_v5 }
 0x34a   :  { %v306_v7 = vmul.f32 1.442695, %v305_v6 }
 0x34b   :  { %v428_v8 = vpop.xlane.xlu1 %427 }
 0x34c   :  { %1289 = vpow2.f32 %v306_v7  ;;  %v429_v9 = vsub.f32 %v425_v3, %v428_v8 }
 0x34e   :  { %v430_v10 = vmul.f32 1.442695, %v429_v9 }
 0x350   :  { %1291 = vpow2.f32 %v430_v10 }
 0x359   :  { %v1290_v11 = vpop.eup %1289 }
 0x35a   :  { %v308_v12 = vsel %vm301_vm1, %v1290_v11, 0.0 }
 0x35b   :  { %309 = vadd.xlane.f32.xlu0 %v308_v12 }
 0x35d   :  { %v1292_v13 = vpop.eup %1291 }
 0x35e   :  { %v432_v14 = vsel %vm301_vm1, %v1292_v13, 0.0 }
 0x35f   :  { %433 = vadd.xlane.f32.xlu1 %v432_v14 }
 0x3e4   :  { %v310_v15 = vpop.xlane.xlu0 %309 }
 0x3e5   :  { %1293 = vrcp.f32 %v310_v15 }
 0x3e8   :  { %v434_v16 = vpop.xlane.xlu1 %433 }
 0x3e9   :  { %1295 = vrcp.f32 %v434_v16 }
 0x3f2   :  { %v1294_v17 = vpop.eup %1293 }
 0x3f3   :  { %v312_v18 = vmul.f32 %v1294_v17, %v1290_v11 }
 0x3f5   :  { %1200 = vmatmul.mubr.msk.f32.vlgmr.msra.gmra.mxu0 %vm301_vm1, %v312_v18 }
 0x3f6   :  { %v1296_v19 = vpop.eup %1295  ;;  %1208 = vmatpush3.msra.mxu0 %v547_v21 }
 0x3f7   :  { %v436_v20 = vmul.f32 %v1296_v19, %v1292_v13  ;;  %1209 = vmatprep.subr.mxu0 %v546_v22  ;;  %v635_v13 = vld [vmem:[%s1678_s9 + $0x18] sm:$0xff] }
 0x3f8   :  { %1210 = vmatpush3.msra.mxu0 %v546_v22 }
 0x3f9   :  { %1205 = vmatmul.mubr.msk.f32.vlgmr.msra.gmra.mxu1 %vm301_vm1, %v436_v20  ;;  %1211 = vmatprep.subr.mxu0 %v545_v23  ;;  %v1040_v20 = vld [vmem:[%s1680_s11] ss:$0 sm:$0xff] }
 0x3fa   :  { %1212 = vmatpush3.msra.mxu0 %v545_v23  ;;  %1243 = vmatpush3.msra.mxu1 %v647_v42 }
 0x3fb   :  { %1213 = vmatprep.subr.mxu0 %v544_v24  ;;  %1244 = vmatprep.subr.mxu1 %v646_v43 }
 0x3fc   :  { %1214 = vmatpush3.msra.mxu0 %v544_v24  ;;  %1245 = vmatpush3.msra.mxu1 %v646_v43  ;;  %v1039_v24 = vld [vmem:[%s1681_s10] ss:$0 sm:$0xff] }
 0x3fd   :  { %1215 = vmatprep.subr.mxu0 %v543_v25  ;;  %1246 = vmatprep.subr.mxu1 %v645_v44  ;;  %v43_v43 = vld [vmem:[%s1682_s1] sm:$0xff] }
 0x3fe   :  { %1216 = vmatpush3.msra.mxu0 %v543_v25  ;;  %1247 = vmatpush3.msra.mxu1 %v645_v44 }
 0x3ff   :  { %1217 = vmatprep.subr.mxu0 %v542_v26  ;;  %1248 = vmatprep.subr.mxu1 %v644_v45 }
 0x400   :  { %1218 = vmatpush3.msra.mxu0 %v542_v26  ;;  %1249 = vmatpush3.msra.mxu1 %v644_v45 }
 0x401   :  { %1219 = vmatprep.subr.mxu0 %v541_v27  ;;  %1250 = vmatprep.subr.mxu1 %v643_v46 }
 0x402   :  { %1220 = vmatpush3.msra.mxu0 %v541_v27  ;;  %1251 = vmatpush3.msra.mxu1 %v643_v46 }
 0x403   :  { %1221 = vmatprep.subr.mxu0 %v540_v28  ;;  %1252 = vmatprep.subr.mxu1 %v642_v47 }
 0x404   :  { %1222 = vmatpush3.msra.mxu0 %v540_v28  ;;  %1253 = vmatpush3.msra.mxu1 %v642_v47 }
 0x405   :  { %1223 = vmatprep.subr.mxu0 %v539_v29  ;;  %1254 = vmatprep.subr.mxu1 %v641_v48 }
 0x406   :  { %1224 = vmatpush3.msra.mxu0 %v539_v29  ;;  %1255 = vmatpush3.msra.mxu1 %v641_v48 }
 0x407   :  { %1225 = vmatprep.subr.mxu0 %v538_v30  ;;  %1256 = vmatprep.subr.mxu1 %v640_v49 }
 0x408   :  { %1226 = vmatpush3.msra.mxu0 %v538_v30  ;;  %1257 = vmatpush3.msra.mxu1 %v640_v49 }
 0x409   :  { %1227 = vmatprep.subr.mxu0 %v537_v31  ;;  %1258 = vmatprep.subr.mxu1 %v639_v50 }
 0x40a   :  { %1228 = vmatpush3.msra.mxu0 %v537_v31  ;;  %1259 = vmatpush3.msra.mxu1 %v639_v50 }
 0x40b   :  { %1229 = vmatprep.subr.mxu0 %v536_v32  ;;  %1260 = vmatprep.subr.mxu1 %v638_v51 }
 0x40c   :  { %1230 = vmatpush3.msra.mxu0 %v536_v32  ;;  %1261 = vmatpush3.msra.mxu1 %v638_v51 }
 0x40d   :  { %1231 = vmatprep.subr.mxu0 %v535_v33  ;;  %1262 = vmatprep.subr.mxu1 %v637_v52 }
 0x40e   :  { %1232 = vmatpush3.msra.mxu0 %v535_v33  ;;  %1263 = vmatpush3.msra.mxu1 %v637_v52 }
 0x40f   :  { %1233 = vmatprep.subr.mxu0 %v534_v34  ;;  %1264 = vmatprep.subr.mxu1 %v636_v53 }
 0x410   :  { %1234 = vmatpush3.msra.mxu0 %v534_v34  ;;  %1265 = vmatpush3.msra.mxu1 %v636_v53 }
 0x411   :  { %1235 = vmatprep.subr.mxu0 %v533_v35  ;;  %1266 = vmatprep.subr.mxu1 %v635_v13 }
 0x412   :  { %1236 = vmatpush3.msra.mxu0 %v533_v35  ;;  %1267 = vmatpush3.msra.mxu1 %v635_v13 }
 0x413   :  { %1237 = vmatprep.subr.mxu0 %v532_v37  ;;  %1268 = vmatprep.subr.mxu1 %v634_v38 }
 0x414   :  { %1238 = vmatpush3.msra.mxu0 %v532_v37  ;;  %1269 = vmatpush3.msra.mxu1 %v634_v38 }
 0x415   :  { %1277 = vmatprep.subr.mxu0 %v1321_v41  ;;  %1270 = vmatprep.subr.mxu1 %v633_v36 }
 0x416   :  { %1271 = vmatpush3.msra.mxu1 %v633_v36 }
 0x4b5   :  { %v382_v54 = vpop.f32.mrf.mxu0 }
 0x4b6   :  { %v512_v56 = vmul.f32 1.442695, %v382_v54  ;;  %vm510_vm4 = vcmp.gt.f32.partialorder %v382_v54, 0.0 }
 0x4b7   :  { %v1201_v57 = vpop.f32.mrf.mxu0 }
 0x4b8   :  { %1297 = vpow2.f32 %v512_v56 }
 0x4b9   :  { %v506_v58 = vpop.f32.mrf.mxu1 }
 0x4ba   :  { %v514_v59 = vmul.f32 1.442695, %v506_v58  ;;  %vm511_vm5 = vcmp.gt.f32.partialorder %v506_v58, 0.0 }
 0x4bb   :  { %v1206_v60 = vpop.f32.mrf.mxu1 }
 0x4bc   :  { %1299 = vpow2.f32 %v514_v59 }
 0x4c5   :  { %v1298_v61 = vpop.eup %1297 }
 0x4c6   :  { %v1034_v62 = vadd.f32 -1.0, %v1298_v61 }
 0x4c8   :  { %v518_v63 = vsel %vm510_vm4, %v382_v54, %v1034_v62 }
 0x4c9   :  { %v1300_v0 = vpop.eup %1299  ;;  %v522_v1 = vmul.f32 1.442695, %v518_v63  ;;  %vm520_vm6 = vcmp.gt.f32.partialorder %v518_v63, 0.0 }
 0x4ca   :  { %v1035_v2 = vadd.f32 -1.0, %v1300_v0 }
 0x4cb   :  { %1301 = vpow2.f32 %v522_v1 }
 0x4cc   :  { %v519_v3 = vsel %vm511_vm5, %v506_v58, %v1035_v2 }
 0x4cd   :  { %v524_v4 = vmul.f32 1.442695, %v519_v3  ;;  %vm521_vm7 = vcmp.gt.f32.partialorder %v519_v3, 0.0 }
 0x4cf   :  { %1303 = vpow2.f32 %v524_v4 }
 0x4d8   :  { %v1302_v5 = vpop.eup %1301 }
 0x4d9   :  { %v1036_v6 = vadd.f32 -1.0, %v1302_v5 }
 0x4db   :  { %v528_v7 = vsel %vm520_vm6, %v518_v63, %v1036_v6 }
 0x4dc   :  { %v1304_v8 = vpop.eup %1303  ;;  %v530_v9 = vadd.f32 %v528_v7, %v142_v39  ;;  %v632_v39 = vld [vmem:[%s1678_s9] sm:$0xff] }
 0x4dd   :  { %v1037_v10 = vadd.f32 -1.0, %v1304_v8  ;;  %1272 = vmatprep.subr.mxu1 %v632_v39 }
 0x4de   :  { %1239 = vmatprep.mubr.f32.mxu0 %v530_v9  ;;  %1273 = vmatpush3.msra.mxu1 %v632_v39 }
 0x4df   :  { %v529_v11 = vsel %vm521_vm7, %v519_v3, %v1037_v10  ;;  %1282 = vmatprep.subr.mxu1 %v1321_v41 }
 0x4e0   :  { %v531_v12 = vadd.f32 %v529_v11, %v143_v40  ;;  %v1038_v40 = vld [vmem:[%s1679_s5] ss:$0 sm:$0xff] }
 0x4e2   :  { %1240 = vmatmul.mubr.f32.vlgmr.msra.gmra.mxu0 %v531_v12 }
 0x4e3   :  { %1279 = vmatprep.mubr.msk.f32.mxu0 %vm1322_vm3, %v1321_v41 }
 0x5a2   :  { %v1241_v14 = vpop.f32.mrf.mxu0 }
 0x5a3   :  { %v1632_v15 = vadd.f32 %v1241_v14, %v1038_v40 }
 0x5a4   :  { %v621_v16 = vpop.f32.mrf.mxu0 }
 0x5a5   :  { %v1634_v17 = vadd.f32 %v1038_v40, %v621_v16  ;;  %v631_v19 = vmax.f32 %v1632_v15, 0.0 }
 0x5a7   :  { %v630_v18 = vmax.f32 %v1634_v17, 0.0 }
 0x5a9   :  { %1274 = vmatprep.mubr.f32.mxu1 %v630_v18 }
 0x5aa   :  { %1275 = vmatmul.mubr.f32.vlgmr.msra.gmra.mxu1 %v631_v19 }
 0x5ab   :  { %1284 = vmatprep.mubr.msk.f32.mxu1 %vm1322_vm3, %v1321_v41 }
 0x66a   :  { %v1276_v21 = vpop.f32.mrf.mxu1 }
 0x66b   :  { %1283 = vmatpush3.msra.mxu1 %v1276_v21  ;;  %v744_v22 = vmul.f32 %v1276_v21, %v1040_v20  ;;  %v732_v26 = vmul.f32 %v1276_v21, %v1039_v24 }
 0x66c   :  { %v716_v23 = vpop.f32.mrf.mxu1 }
 0x66d   :  { %747 = vadd.xlane.f32.xlu1 %v744_v22  ;;  %1278 = vmatpush3.msra.mxu0 %v716_v23  ;;  %v743_v25 = vmul.f32 %v1040_v20, %v716_v23  ;;  %v731_v27 = vmul.f32 %v1039_v24, %v716_v23 }
 0x66f   :  { %745 = vadd.xlane.f32.xlu0 %v743_v25 }
 0x671   :  { %735 = vadd.xlane.f32.xlu1 %v732_v26 }
 0x673   :  { %733 = vadd.xlane.f32.xlu0 %v731_v27 }
 0x6f6   :  { %v748_v41 = vpop.xlane.xlu1 %747 }
 0x6f7   :  { %874 = vxpose.xlu1.b32.start.end [1/1] (short) (narrow) %v748_v41, 8 }
 0x6f8   :  { %v746_v28 = vpop.xlane.xlu0 %745 }
 0x6f9   :  { %749 = vxpose.xlu0.b32.start.end [1/1] (short) (narrow) %v746_v28, 8 }
 0x6fa   :  { %v736_v29 = vpop.xlane.xlu1 %735 }
 0x6fc   :  { %v734_v30 = vpop.xlane.xlu0 %733 }
 0x773   :  { %v890_v31 = vpop.trf.xlu1 }
 0x774   :  { %v909_v32 = vrot.slane %v890_v31, %v1511_v55 }
 0x775   :  { %v765_v33 = vpop.trf.xlu0 }
 0x776   :  { %v910_v34 = vadd.f32 %v909_v32, %v736_v29  ;;  %v784_v35 = vrot.slane %v765_v33, %v1511_v55 }
 0x778   :  { %v912_v37 = vmul.f32 0.2, %v910_v34  ;;  %v785_v42 = vadd.f32 %v784_v35, %v734_v30  ;;  %vm911_vm8 = vcmp.gt.f32.partialorder %v910_v34, 0.0 }
 0x77a   :  { %v787_v44 = vmul.f32 0.2, %v785_v42  ;;  %v913_v45 = vsel %vm911_vm8, %v910_v34, %v912_v37  ;;  %vm786_vm9 = vcmp.gt.f32.partialorder %v785_v42, 0.0 }
 0x77b   :  { %v914_v46 = vadd.f32 %v913_v45, %v43_v43 }
 0x77c   :  { %v788_v47 = vsel %vm786_vm9, %v785_v42, %v787_v44 }
 0x77d   :  { %v915_v48 = vsel %vm301_vm1, %v914_v46, -inf  ;;  %v789_v49 = vadd.f32 %v788_v47, %v43_v43 }
 0x77e   :  { %916 = vmax.xlane.f32.xlu1 %v915_v48 }
 0x77f   :  { %v790_v50 = vsel %vm301_vm1, %v789_v49, -inf }
 0x780   :  { %791 = vmax.xlane.f32.xlu0 %v790_v50 }
 0x807   :  { %v917_v55 = vpop.xlane.xlu1 %916 }
 0x808   :  { %v918_v51 = vsub.f32 %v914_v46, %v917_v55 }
 0x809   :  { %v792_v52 = vpop.xlane.xlu0 %791 }
 0x80a   :  { %v919_v53 = vmul.f32 1.442695, %v918_v51  ;;  %v793_v54 = vsub.f32 %v789_v49, %v792_v52 }
 0x80c   :  { %1305 = vpow2.f32 %v919_v53  ;;  %v794_v56 = vmul.f32 1.442695, %v793_v54 }
 0x80e   :  { %1307 = vpow2.f32 %v794_v56 }
 0x819   :  { %v1306_v57 = vpop.eup %1305 }
 0x81a   :  { %v921_v58 = vsel %vm301_vm1, %v1306_v57, 0.0 }
 0x81b   :  { %v1308_v59 = vpop.eup %1307  ;;  %922 = vadd.xlane.f32.xlu1 %v921_v58 }
 0x81c   :  { %v796_v60 = vsel %vm301_vm1, %v1308_v59, 0.0 }
 0x81d   :  { %797 = vadd.xlane.f32.xlu0 %v796_v60 }
 0x8a4   :  { %v923_v61 = vpop.xlane.xlu1 %922 }
 0x8a5   :  { %1309 = vrcp.f32 %v923_v61 }
 0x8a6   :  { %v798_v62 = vpop.xlane.xlu0 %797 }
 0x8a7   :  { %1311 = vrcp.f32 %v798_v62 }
 0x8b2   :  { %v1310_v63 = vpop.eup %1309 }
 0x8b3   :  { %v925_v0 = vmul.f32 %v1310_v63, %v1306_v57 }
 0x8b4   :  { %v1312_v1 = vpop.eup %1311 }
 0x8b5   :  { %1285 = vmatmul.mubr.msk.f32.vlgmr.msra.gmra.mxu1 %vm301_vm1, %v925_v0  ;;  %v800_v2 = vmul.f32 %v1312_v1, %v1308_v59 }
 0x8b7   :  { %1280 = vmatmul.mubr.msk.f32.vlgmr.msra.gmra.mxu0 %vm301_vm1, %v800_v2 }
 0x975   :  { %v995_v3 = vpop.f32.mrf.mxu1 }
 0x976   :  { %v1003_v4 = vmul.f32 1.442695, %v995_v3  ;;  %vm1000_vm10 = vcmp.gt.f32.partialorder %v995_v3, 0.0 }
 0x977   :  { %v870_v5 = vpop.f32.mrf.mxu0  ;;  %v1286_v6 = vpop.f32.mrf.mxu1 }
 0x978   :  { %1313 = vpow2.f32 %v1003_v4  ;;  %v1001_v7 = vmul.f32 1.442695, %v870_v5  ;;  %vm999_vm11 = vcmp.gt.f32.partialorder %v870_v5, 0.0 }
 0x979   :  { %v1281_v8 = vpop.f32.mrf.mxu0 }
 0x97a   :  { %1315 = vpow2.f32 %v1001_v7 }
 0x985   :  { %v1314_v9 = vpop.eup %1313 }
 0x986   :  { %v1044_v10 = vadd.f32 -1.0, %v1314_v9 }
 0x987   :  { %v1316_v11 = vpop.eup %1315 }
 0x988   :  { %v1008_v12 = vsel %vm1000_vm10, %v995_v3, %v1044_v10  ;;  %v1043_v13 = vadd.f32 -1.0, %v1316_v11 }
 0x989   :  { %v1013_v38 = vmul.f32 1.442695, %v1008_v12  ;;  %vm1010_vm12 = vcmp.gt.f32.partialorder %v1008_v12, 0.0 }
 0x98a   :  { %v1007_v36 = vsel %vm999_vm11, %v870_v5, %v1043_v13 }
 0x98b   :  { %1317 = vpow2.f32 %v1013_v38  ;;  %v1011_v39 = vmul.f32 1.442695, %v1007_v36  ;;  %vm1009_vm13 = vcmp.gt.f32.partialorder %v1007_v36, 0.0 }
 0x98d   :  { %1319 = vpow2.f32 %v1011_v39 }
 0x998   :  { %v1318_v40 = vpop.eup %1317 }
 0x999   :  { %v1046_v14 = vadd.f32 -1.0, %v1318_v40 }
 0x99a   :  { %v1320_v16 = vpop.eup %1319 }
 0x99b   :  { %v1018_v20 = vsel %vm1010_vm12, %v1008_v12, %v1046_v14  ;;  %v1045_v21 = vadd.f32 -1.0, %v1320_v16 }
 0x99c   :  { %v1020_v22 = vadd.f32 %v1018_v20, %v631_v19 }
 0x99d   :  { %v1017_v23 = vsel %vm1009_vm13, %v1007_v36, %v1045_v21 }
 0x99e   :  { %v1022_v24 = vmax.f32 %v1020_v22, 0.0  ;;  %v1019_v25 = vadd.f32 %v1017_v23, %v630_v18 }
 0x9a0   :  { %1024 = vst [vmem:[%s1683_s12 + $0x8] sm:$0xff] %v1022_v24  ;;  %v1021_v26 = vmax.f32 %v1019_v25, 0.0 }
 0x9a2   :  { %1023 = vst [vmem:[%s1683_s12] sm:$0xff] %v1021_v26 }

</bundles_post_ra>
